<compile_context>
chip_gen: v7x
topology: tpu7x:2x2x1
jax: 0.10.0
libtpu: 0.0.40
codegen_flags: <defaults>
</compile_context>

<pallas_src>
import jax
import jax.numpy as jnp
from jax.experimental import pallas as pl
from jax.experimental.pallas import tpu as pltpu


def _adapter_fused_kernel(x_ref, wc_ref, out_ref):
    # x_ref:   (B, Kp)  pre-concatenated [z | dens | inten | one_hot(style) | inst | 1 | 0-pad]
    # wc_ref:  (Kp, max_len*d_model)  block-diagonal fused weight (bias folded in)
    # out_ref: (B, max_len*d_model)   lane-dense output slab
    out_ref[...] = jnp.dot(x_ref[...], wc_ref[...],
                           preferred_element_type=jnp.float32)


def _round_up(n, m):
    return ((n + m - 1) // m) * m


def prepare_fused_params(params, cfg):
    """One-time parameter re-layout (hoisted out of the forward path).

    Builds a block-diagonal fused weight Wc of shape (Kp, max_len*d_model) so
    that, with x = concat([z, density, intensity, one_hot(style), inst, 1.0],
    padded to Kp columns),  x @ Wc  reproduces the PyTorch forward exactly for
    every time-step:
      - wlat columns land at t*d_model + [0, temp_dim)         (latent_linear)
      - exact 1.0 identity columns pass density / intensity through
      - style_tab / winst columns are replicated per time-step  (the "tile")
      - the last valid row carries the combined bias (latent + inst biases),
        activated by the constant-1.0 column of x.
    """
    (latent_dim, style_emb_dim, inst_emb_dim, d_model,
     n_style, n_inst, max_len, temp_dim) = (
        cfg["latent_dim"], cfg["style_emb_dim"], cfg["inst_emb_dim"],
        cfg["d_model"], cfg["n_style"], cfg["n_inst"], cfg["max_len"],
        cfg["temp_dim"])

    K = latent_dim + 2 + n_style + n_inst + 1     # +1 = bias column
    Kp = _round_up(K, 8)                          # clean sublane tiles for Wc

    wlat3 = params["wlat"].reshape(latent_dim, max_len, temp_dim)   # (L, T, temp)
    blat2 = params["blat"].reshape(max_len, temp_dim)               # (T, temp)
    style_tab = params["style_tab"]                                 # (n_style, S)
    winst = params["winst"]                                         # (n_inst, I)
    binst = params["binst"].reshape(1, inst_emb_dim)                # (1, I)

    # Output-column layout per time-step t (matches the torch.cat order):
    #   [0, temp)           latent slice for t
    #   [temp]              density  (exact identity column)
    #   [temp+1]            intensity (exact identity column)
    #   [temp+2, temp+2+S)  style embedding (replicated over t)
    #   [temp+2+S, d_model) inst embedding  (replicated over t)
    c_dens = temp_dim
    c_inten = temp_dim + 1
    c_sty = temp_dim + 2
    c_ins = temp_dim + 2 + style_emb_dim

    Wc = jnp.zeros((Kp, max_len, d_model), jnp.float32)
    Wc = Wc.at[:latent_dim, :, :temp_dim].set(wlat3)
    Wc = Wc.at[latent_dim, :, c_dens].set(1.0)
    Wc = Wc.at[latent_dim + 1, :, c_inten].set(1.0)
    Wc = Wc.at[latent_dim + 2:latent_dim + 2 + n_style, :,
               c_sty:c_sty + style_emb_dim].set(
        jnp.broadcast_to(style_tab[:, None, :],
                         (n_style, max_len, style_emb_dim)))
    Wc = Wc.at[latent_dim + 2 + n_style:latent_dim + 2 + n_style + n_inst, :,
               c_ins:].set(
        jnp.broadcast_to(winst[:, None, :], (n_inst, max_len, inst_emb_dim)))

    # Bias folded into the last valid row (activated by the constant-1 column).
    bias_row = jnp.zeros((max_len, d_model), jnp.float32)
    bias_row = bias_row.at[:, :temp_dim].set(blat2)
    bias_row = bias_row.at[:, c_ins:].set(
        jnp.broadcast_to(binst, (max_len, inst_emb_dim)))
    Wc = Wc.at[K - 1].set(bias_row)

    return Wc.reshape(Kp, max_len * d_model)


def decoder_input_adapter(z, density, intensity, style, inst, Wc, cfg):
    """JAX/Pallas equivalent of DecoderInputAdapter.forward.

    z:         (B, latent_dim)      float32
    density:   (B, 1, 1)            float32
    intensity: (B, 1, 1)            float32
    style:     (B, 1)               int32
    inst:      (B, 1, n_inst)       float32
    Wc:        precomputed fused weight from prepare_fused_params
    returns    (B, max_len, d_model) float32
    """
    latent_dim = cfg["latent_dim"]
    d_model = cfg["d_model"]
    n_style = cfg["n_style"]
    n_inst = cfg["n_inst"]
    max_len = cfg["max_len"]
    B = z.shape[0]
    K = latent_dim + 2 + n_style + n_inst + 1
    Kp = Wc.shape[0]
    TD = max_len * d_model

    # Wrapper glue: build the single pre-concatenated LHS (one input DMA).
    # TODO(synk): jax.nn.one_hot yields an all-zero row for an out-of-range
    # style index, whereas nn.Embedding would raise.
    dens2 = density.reshape(B, 1).astype(jnp.float32)
    inten2 = intensity.reshape(B, 1).astype(jnp.float32)
    style_oh = jax.nn.one_hot(style.reshape(B), n_style, dtype=jnp.float32)
    inst2 = inst.reshape(B, n_inst).astype(jnp.float32)
    ones = jnp.ones((B, 1), jnp.float32)                     # bias column
    x = jnp.concatenate([z.astype(jnp.float32), dens2, inten2,
                         style_oh, inst2, ones], axis=-1)    # (B, K)
    if Kp > K:
        x = jnp.pad(x, ((0, 0), (0, Kp - K)))                # (B, Kp)

    out_flat = pl.pallas_call(
        _adapter_fused_kernel,
        out_shape=jax.ShapeDtypeStruct((B, TD), jnp.float32),
        in_specs=[
            pl.BlockSpec(memory_space=pltpu.MemorySpace.VMEM),
            pl.BlockSpec(memory_space=pltpu.MemorySpace.VMEM),
        ],
        out_specs=pl.BlockSpec(memory_space=pltpu.MemorySpace.VMEM),
    )(x, Wc)

    # Contiguous (free) reshape to the PyTorch layout (B, max_len, d_model).
    return out_flat.reshape(B, max_len, d_model)


def reference(z, density, intensity, style, inst, params, cfg):
    """Pure-JAX reference mirroring the PyTorch forward exactly."""
    B = z.shape[0]
    T = cfg["max_len"]
    zf = z @ params["wlat"] + params["blat"]
    zr = zf.reshape(B, T, cfg["temp_dim"])
    dens = jnp.tile(density, (1, T, 1))
    inten = jnp.tile(intensity, (1, T, 1))
    sty = jnp.tile(params["style_tab"][style.reshape(B)][:, None, :], (1, T, 1))
    ins_e = inst.reshape(B, cfg["n_inst"]) @ params["winst"] + params["binst"]
    ins = jnp.tile(ins_e[:, None, :], (1, T, 1))
    return jnp.concatenate([zr, dens, inten, sty, ins], axis=-1)


if __name__ == "__main__":
    # Small, consistent config:
    B = 2
    latent_dim = 32
    style_emb_dim = 8
    inst_emb_dim = 8
    d_model = 32
    n_style = 4
    n_inst = 6
    max_len = 8
    temp_dim = d_model - inst_emb_dim - style_emb_dim - 2  # 14
    cfg = dict(latent_dim=latent_dim, style_emb_dim=style_emb_dim,
               inst_emb_dim=inst_emb_dim, d_model=d_model, n_style=n_style,
               n_inst=n_inst, max_len=max_len, temp_dim=temp_dim)

    key = jax.random.PRNGKey(0)
    ks = jax.random.split(key, 9)

    # Deterministic synthetic parameters (shapes from __init__ / init_weights).
    params = {
        # latent_linear: weight U(-0.1, 0.1), bias zeros (per init_weights),
        # stored transposed (in, out) for direct x @ W use.
        "wlat": jax.random.uniform(ks[0], (latent_dim, max_len * temp_dim),
                                   minval=-0.1, maxval=0.1, dtype=jnp.float32),
        "blat": jnp.zeros((max_len * temp_dim,), jnp.float32),
        # style_emb: Embedding(n_style, style_emb_dim)
        "style_tab": jax.random.normal(ks[1], (n_style, style_emb_dim),
                                       jnp.float32),
        # inst_emb: Linear(n_inst, inst_emb_dim), stored transposed (in, out).
        "winst": jax.random.uniform(ks[2], (n_inst, inst_emb_dim),
                                    minval=-0.3, maxval=0.3, dtype=jnp.float32),
        "binst": jax.random.uniform(ks[3], (inst_emb_dim,),
                                    minval=-0.3, maxval=0.3, dtype=jnp.float32),
    }

    # Deterministic example inputs.
    z = jax.random.normal(ks[4], (B, latent_dim), jnp.float32)
    density = jax.random.uniform(ks[5], (B, 1, 1), dtype=jnp.float32)
    intensity = jax.random.uniform(ks[6], (B, 1, 1), dtype=jnp.float32)
    style = jax.random.randint(ks[7], (B, 1), 0, n_style, dtype=jnp.int32)
    inst = jax.random.uniform(ks[8], (B, 1, n_inst), dtype=jnp.float32)

    # One-time fused parameter preparation (hoisted out of the forward path).
    Wc = jax.block_until_ready(prepare_fused_params(params, cfg))

    # Jit the per-call path so the small input glue fuses around the kernel.
    fwd = jax.jit(lambda z_, d_, i_, s_, n_: decoder_input_adapter(
        z_, d_, i_, s_, n_, Wc, cfg))

    out = fwd(z, density, intensity, style, inst)
    out = jax.block_until_ready(out)

    ref = reference(z, density, intensity, style, inst, params, cfg)
    assert out.shape == (B, max_len, d_model), out.shape
    # f32 path; identity/one-hot columns go through the MXU, so compare to
    # f32-matmul precision rather than bit-exactness.
    assert jnp.allclose(out, ref, atol=1e-4, rtol=1e-4), "mismatch vs reference"

    print("KERNEL_OK")
</pallas_src>

<mosaic_0001>
module attributes {stable_mosaic.version = 11 : i64} {
  func.func @_adapter_fused_kernel(%arg0: memref<2x48xf32, #tpu.memory_space<vmem>>, %arg1: memref<48x256xf32, #tpu.memory_space<vmem>>, %arg2: memref<2x256xf32, #tpu.memory_space<vmem>>) attributes {dimension_semantics = [], scalar_prefetch = 0 : i64, scratch_operands = 0 : i64, tpu.core_type = #tpu.core_type<tc>} {
    %c0 = arith.constant 0 : index
    %c0_0 = arith.constant 0 : index
    %0 = vector.load %arg0[%c0, %c0_0] : memref<2x48xf32, #tpu.memory_space<vmem>>, vector<2x48xf32>
    %c0_1 = arith.constant 0 : index
    %c0_2 = arith.constant 0 : index
    %1 = vector.load %arg1[%c0_1, %c0_2] : memref<48x256xf32, #tpu.memory_space<vmem>>, vector<48x256xf32>
    %cst = arith.constant dense<0.000000e+00> : vector<2x256xf32>
    %2 = tpu.matmul %0, %1, %cst {dimension_numbers = #tpu.dot_dimension_numbers<[1], [0], [0], [1], [0, 0, 1, 1], [], []>} : vector<2x48xf32>, vector<48x256xf32>, vector<2x256xf32> -> vector<2x256xf32>
    %c0_3 = arith.constant 0 : index
    %c0_4 = arith.constant 0 : index
    %3 = vector.load %arg2[%c0_3, %c0_4] : memref<2x256xf32, #tpu.memory_space<vmem>>, vector<2x256xf32>
    tpu.vector_store %arg2[%c0_3, %c0_4], %2 {strides = array<i32>} : memref<2x256xf32, #tpu.memory_space<vmem>>, vector<2x256xf32>,
    return
  }
}

</mosaic_0001>

<bundles_post_ra>
// kernel: _lambda_.1
= control target key start
LH: loop header
LB: loop body
LE: loop exit
PB: predicated region body
PF: predicated region fallthrough
CT: control target
= control target key end

     0   :  { %7 = vsyncpa [#allocation3], 0  ;;  %s172_s9 = smov [#allocation2]   ;;  %s209_s0 = inlined_call_operand.vmem [shape: f32[2,48], index: 0, kind: input, shape index: {}]   ;;  %s210_s1 = inlined_call_operand.hbm [shape: f32[48,256], index: 1, kind: input, shape index: {}]   ;;  %s211_s2 = inlined_call_operand.vmem [shape: f32[2,256], index: 2, kind: output, shape index: {}]  }
   0x1   :  { %s15_s10 = sshll.u32 %s172_s9, 4  ;;  %s148_s13 = scalar_lea.hbm %s210_s1, 1536  ;;  %s16_s10 = int_to_ptr.vmem [resolvable:$true] %s15_s10 }
   0x2   :  { %p149_p0 = scmp.ne.s32.totalorder %s210_s1, %s148_s13  ;;  %p152_p1 = scmp.lt.u32.totalorder %s148_s13, %s210_s1 }
   0x4   :  { %p154_p2 = pnand %p152_p1, %p149_p0 }
   0x6   :  { %157 = shalt.err (!%p154_p2)
}
   0x7   :  { %s158_s18 = scalar_lea.vmem %s16_s10, 1536  ;;  %p163_p4 = scmp.lt.s32.totalorder %s16_s10, %s16_s10 }
   0x8   :  { %p159_p3 = scmp.ne.s32.totalorder %s16_s10, %s158_s18  ;;  %p164_p5 = scmp.lt.s32.totalorder %s158_s18, %s158_s18 }
   0xa   :  { %p165_p6 = por %p164_p5, %p163_p4 }
   0xc   :  { %p166_p7 = pnand %p165_p6, %p159_p3 }
   0xe   :  { %169 = shalt.err (!%p166_p7)
}
   0xf   :  { %s173_s19 = smov 256   ;;  %s174_s20 = smov 16  }
  0x10   :  { %21 = dma.hbm_to_vmem [thread:$0]  %s210_s1, 1536, %s16_s10, [#allocation3], %s173_s19, %s173_s19, %s174_s20  }
  0x11   :  { %170 = dma.done.wait [#allocation3], 1536  }
  0x12   :  { %171 = vsyncadd [#allocation3], 4294965760  ;;  %v175_v0 = vmov 0.0   ;;  %v27_v1 = vld [vmem:[#allocation2 + $0x8] sm:$0xff]  ;;  %v29_v2 = vld [vmem:[#allocation2 + $0x18] sm:$0xff]  ;;  %vm38_vm0 = vcmask 392192  }
  0x13   :  { %106 = vmatprep.mubr.f32.mxu0 %v175_v0  ;;  %v26_v3 = vld [vmem:[#allocation2] sm:$0xff]  ;;  %v132_v4 = vpack.c.bf16 %v29_v2, %v27_v1  ;;  %v28_v5 = vld [vmem:[#allocation2 + $0x10] sm:$0xff]  ;;  %v31_v6 = vld [vmem:[#allocation2 + $0x28] sm:$0xff] }
  0x14   :  { %v33_v7 = vld [vmem:[#allocation2 + $0x38] sm:$0xff]  ;;  %v134_v8 = vpack.c.bf16 %v28_v5, %v26_v3  ;;  %v30_v10 = vld [vmem:[#allocation2 + $0x20] sm:$0xff]  ;;  %v32_v11 = vld [vmem:[#allocation2 + $0x30] sm:$0xff] }
  0x15   :  { %v136_v9 = vpack.c.bf16 %v33_v7, %v31_v6  ;;  %v35_v12 = vld [vmem:[#allocation2 + $0x48] sm:$0xff]  ;;  %133 = vmatprep.subr.bf16.mxu0 %v132_v4  ;;  %v37_v13 = vld [vmem:[#allocation2 + $0x58] sm:$0xff]  ;;  %v138_v14 = vpack.c.bf16 %v32_v11, %v30_v10  ;;  %v34_v16 = vld [vmem:[#allocation2 + $0x40] sm:$0xff] }
  0x16   :  { %135 = vmatpush1.bf16.msra.mxu0 %v134_v8  ;;  %v140_v15 = vpack.c.bf16 %v37_v13, %v35_v12  ;;  %v36_v17 = vld [vmem:[#allocation2 + $0x50] sm:$0xff]  ;;  %v25_v19 = vld [vmem:[%s209_s0] sm:$0x3] }
  0x17   :  { %137 = vmatprep.subr.bf16.mxu0 %v136_v9  ;;  %v142_v18 = vpack.c.bf16 %v36_v17, %v34_v16 }
  0x1a   :  { %139 = vmatpush1.bf16.msra.mxu0 %v138_v14 }
  0x1b   :  { %141 = vmatprep.subr.bf16.mxu0 %v140_v15 }
  0x1e   :  { %143 = vmatpush1.bf16.msra.mxu0 %v142_v18 }
  0x21   :  { %130 = vmatmul.mubr.msk.f32.vlgmr.msra.gmra.mrb[0].mxu0 %vm38_vm0, %v25_v19 }
  0xf4   :  { %v108_v20 = vpop.f32.mrb[0].mxu0 }
  0xf5   :  { %v110_v21 = vpop.f32.mrb[1].mxu0 }
  0xf6   :  { %v115_v22 = vcombine.low %v108_v20, %v110_v21 }
  0xf8   :  { %131 = vst.sshfl [vmem:[%s211_s2] sm:$0x33 pattern:$0x76325410] %v115_v22 }
  0xf9   :  { %129 = vsyncpa [#allocation3], 1 }

</bundles_post_ra>
